<compile_context>
chip_gen: v6e
topology: v6e:2x2x1
jax: 0.10.0
libtpu: 0.0.40
codegen_flags: <defaults>
</compile_context>

<pallas_src>
import numpy as np
import jax
import jax.numpy as jnp
from jax.experimental import pallas as pl
from jax.experimental.pallas import tpu as pltpu


# ---------------------------------------------------------------------------
# Kernel: one grid step handles one (T1, tile) column slab of the output.
# ---------------------------------------------------------------------------
def fusion_kernel(w0_ref, interp_ref, cnn_ref, i3d_ref, o_ref):
    """
    w0_ref     : SMEM (1,)      softmax weight of the CNN branch (f32)
    interp_ref : VMEM (T1, T2)  linear-interp matrix, pre-scaled by w1 (f32)
    cnn_ref    : VMEM (T1, C)   CNN features  (C = lane tile)
    i3d_ref    : VMEM (T2, C)   I3D features
    o_ref      : VMEM (T1, C)
    """
    w0 = w0_ref[0]
    # Temporal up-sampling of the I3D features (w1 already folded into interp)
    # as a single MXU matmul with an f32 accumulator.  interp stays f32 so the
    # interpolation fractions / w1 are not quantized when activations are bf16.
    i3d_up = jnp.dot(interp_ref[...], i3d_ref[...].astype(jnp.float32),
                     preferred_element_type=jnp.float32)
    # Weighted fusion as one fused expression -> a single downcast store
    # (keeps the v5e single vst slot / HBM writeback as the only store traffic).
    o_ref[...] = (w0 * cnn_ref[...].astype(jnp.float32) + i3d_up).astype(o_ref.dtype)
    # TODO(synk): for very large T2 (hundreds of frames) replace the dense
    # (T1, T2) matmul with a 2-tap lerp driven by scalar-prefetched idx0/frac.


# ---------------------------------------------------------------------------
# Interpolation matrix, built on the host (shape-static baked constant).
# Matches F.interpolate(mode='linear', align_corners=True) along time.
# ---------------------------------------------------------------------------
def make_interp_matrix_np(t1: int, t2: int) -> np.ndarray:
    w = np.zeros((t1, t2), dtype=np.float32)
    if t2 == 1:
        w[:, 0] = 1.0
        return w
    if t1 == 1:
        w[0, 0] = 1.0
        return w
    scale = (t2 - 1) / (t1 - 1)                     # align_corners=True
    pos = np.arange(t1, dtype=np.float64) * scale
    idx0 = np.clip(np.floor(pos).astype(np.int64), 0, t2 - 2)
    frac = (pos - idx0).astype(np.float32)
    rows = np.arange(t1)
    w[rows, idx0] += 1.0 - frac
    w[rows, idx0 + 1] += frac
    return w


# ---------------------------------------------------------------------------
# Per-generation VMEM budgeting.
# ---------------------------------------------------------------------------
def _vmem_budget_and_limit():
    try:
        cap = int(getattr(pltpu.get_tpu_info(), "vmem_capacity_bytes",
                          64 * 1024 * 1024))
    except Exception:
        cap = 64 * 1024 * 1024                       # conservative: assume v7x
    if cap >= 100 * 1024 * 1024:                     # v5e / v6e: 128 MiB VMEM
        return 56 * 1024 * 1024, 72 * 1024 * 1024
    return 32 * 1024 * 1024, 44 * 1024 * 1024        # v7x: stay well under 64 MiB


def _max_tile_cols(t1, t2, itemsize, budget):
    # Per output column:
    #   double-buffered cnn / i3d / out blocks        : 2*(2*T1 + T2)*itemsize
    #   f32 intermediates (matmul result + upcasts),
    #   not double-buffered                           : (2*T1 + T2)*4
    per_col = 2 * (2 * t1 + t2) * itemsize + (2 * t1 + t2) * 4
    fixed = 2 * t1 * t2 * 4                          # interp matrix (f32, x2)
    avail = max(budget - fixed, 128 * per_col)
    return max(128, (avail // per_col) // 128 * 128)


def _pick_tile_cols(n_cols, max_cols, t1, t2, itemsize,
                    min_total_steps, other_steps):
    """Lane-axis tile: a multiple of 128 (unless n_cols < 128 -> full extent).
    Ragged last blocks are handled by grid = cdiv(n_cols, tile) + edge masking.
    """
    if n_cols < 128:
        return n_cols                                # full extent, one block
    tile = max(128, min(max_cols, (n_cols // 128) * 128))
    # Guarantee >= min_total_steps grid steps (megacore sharding + pipeline
    # overlap), but only while each step still moves >= ~1 MiB of HBM traffic.
    per_col_hbm = (2 * t1 + t2) * itemsize
    min_tile = max(128, ((1 << 20) // max(per_col_hbm, 1)) // 128 * 128)
    while other_steps * pl.cdiv(n_cols, tile) < min_total_steps and tile >= 2 * min_tile:
        tile = max(min_tile, ((tile // 2) // 128) * 128)
    return tile


# ---------------------------------------------------------------------------
# Wrapper
# ---------------------------------------------------------------------------
def feature_fusion(cnn_feat, i3d_feat, weights):
    """cnn_feat: [B, T1, D], i3d_feat: [B, T2, D], weights: [2] -> [B, T1, D]"""
    B, T1, D = cnn_feat.shape
    _, T2, _ = i3d_feat.shape
    act_dtype = cnn_feat.dtype
    itemsize = jnp.dtype(act_dtype).itemsize

    # Hoisted 2-element softmax (tiny scalar XLA op); w1 folded into interp.
    w = jax.nn.softmax(weights.astype(jnp.float32))
    w0 = w[0:1]                                              # (1,) SMEM scalar
    interp = jnp.asarray(make_interp_matrix_np(T1, T2)) * w[1]   # f32 (T1, T2)

    budget, vmem_limit = _vmem_budget_and_limit()
    max_cols = _max_tile_cols(T1, T2, itemsize, budget)

    if D >= 128 and D % 128 == 0:
        # ----- native-layout path: no wrapper transposes / reshapes ----------
        d_tile = _pick_tile_cols(D, max_cols, T1, T2, itemsize,
                                 min_total_steps=4, other_steps=B)
        grid = (B, pl.cdiv(D, d_tile))
        return pl.pallas_call(
            fusion_kernel,
            out_shape=jax.ShapeDtypeStruct((B, T1, D), act_dtype),
            grid=grid,
            in_specs=[
                pl.BlockSpec(memory_space=pltpu.MemorySpace.SMEM),
                # constant block index -> fetched once, reused across the grid
                pl.BlockSpec((T1, T2), lambda b, d: (0, 0)),
                pl.BlockSpec((None, T1, d_tile), lambda b, d: (b, 0, d)),
                pl.BlockSpec((None, T2, d_tile), lambda b, d: (b, 0, d)),
            ],
            out_specs=pl.BlockSpec((None, T1, d_tile), lambda b, d: (b, 0, d)),
            compiler_params=pltpu.CompilerParams(
                dimension_semantics=("parallel", "parallel"),
                vmem_limit_bytes=vmem_limit,
            ),
        )(w0, interp, cnn_feat, i3d_feat)

    # ----- fallback: fold batch into the lane axis (small / ragged D) --------
    n_cols = B * D
    cnn_cols = jnp.transpose(cnn_feat, (1, 0, 2)).reshape(T1, n_cols)
    i3d_cols = jnp.transpose(i3d_feat, (1, 0, 2)).reshape(T2, n_cols)
    col_tile = _pick_tile_cols(n_cols, max_cols, T1, T2, itemsize,
                               min_total_steps=4, other_steps=1)
    grid = (pl.cdiv(n_cols, col_tile),)
    out_cols = pl.pallas_call(
        fusion_kernel,
        out_shape=jax.ShapeDtypeStruct((T1, n_cols), act_dtype),
        grid=grid,
        in_specs=[
            pl.BlockSpec(memory_space=pltpu.MemorySpace.SMEM),
            pl.BlockSpec((T1, T2), lambda c: (0, 0)),
            pl.BlockSpec((T1, col_tile), lambda c: (0, c)),
            pl.BlockSpec((T2, col_tile), lambda c: (0, c)),
        ],
        out_specs=pl.BlockSpec((T1, col_tile), lambda c: (0, c)),
        compiler_params=pltpu.CompilerParams(
            dimension_semantics=("parallel",),
            vmem_limit_bytes=vmem_limit,
        ),
    )(w0, interp, cnn_cols, i3d_cols)
    return out_cols.reshape(T1, B, D).transpose(1, 0, 2)


# ---------------------------------------------------------------------------
# Pure-JAX reference (mirrors the PyTorch forward) for correctness checks
# ---------------------------------------------------------------------------
def feature_fusion_ref(cnn_feat, i3d_feat, weights):
    B, T1, D = cnn_feat.shape
    _, T2, _ = i3d_feat.shape
    interp = jnp.asarray(make_interp_matrix_np(T1, T2))
    i3d_up = jnp.einsum("ts,bsd->btd", interp, i3d_feat.astype(jnp.float32))
    w = jax.nn.softmax(weights.astype(jnp.float32))
    return (w[0] * cnn_feat.astype(jnp.float32) + w[1] * i3d_up).astype(cnn_feat.dtype)


if __name__ == "__main__":
    key = jax.random.PRNGKey(0)

    # --- small test matching the module's shapes (fold-path, D < 128) -------
    B, T1, T2, D = 2, 16, 8, 32
    k1, k2 = jax.random.split(key)
    cnn_feat = jax.random.normal(k1, (B, T1, D), dtype=jnp.float32)
    i3d_feat = jax.random.normal(k2, (B, T2, D), dtype=jnp.float32)
    weights = jnp.array([0.5, 0.5], dtype=jnp.float32)       # module's init

    out = jax.block_until_ready(feature_fusion(cnn_feat, i3d_feat, weights))
    ref = feature_fusion_ref(cnn_feat, i3d_feat, weights)
    assert out.shape == (B, T1, D)
    assert jnp.allclose(out, ref, atol=1e-5, rtol=1e-5), "mismatch (f32, fold path)"

    # --- native-layout path (D a multiple of 128), f32 ----------------------
    B2, D2 = 2, 256
    k3, k4 = jax.random.split(k1)
    cnn2 = jax.random.normal(k3, (B2, T1, D2), dtype=jnp.float32)
    i3d2 = jax.random.normal(k4, (B2, T2, D2), dtype=jnp.float32)
    w2 = jnp.array([0.3, 0.9], dtype=jnp.float32)
    out2 = jax.block_until_ready(feature_fusion(cnn2, i3d2, w2))
    ref2 = feature_fusion_ref(cnn2, i3d2, w2)
    assert jnp.allclose(out2, ref2, atol=1e-5, rtol=1e-5), "mismatch (f32, native path)"

    # --- native-layout path, bf16 activations (relaxed tolerance) -----------
    cnn3 = cnn2.astype(jnp.bfloat16)
    i3d3 = i3d2.astype(jnp.bfloat16)
    out3 = jax.block_until_ready(feature_fusion(cnn3, i3d3, w2))
    ref3 = feature_fusion_ref(cnn3, i3d3, w2)
    assert jnp.allclose(out3.astype(jnp.float32), ref3.astype(jnp.float32),
                        atol=5e-2, rtol=5e-2), "mismatch (bf16, native path)"

    print("KERNEL_OK")
</pallas_src>

<mosaic_0001>
module attributes {stable_mosaic.version = 11 : i64} {
  func.func @fusion_kernel(%arg0: i32, %arg1: memref<1xf32, #tpu.memory_space<smem>>, %arg2: memref<16x8xf32, #tpu.memory_space<vmem>>, %arg3: memref<16x64xf32, #tpu.memory_space<vmem>>, %arg4: memref<8x64xf32, #tpu.memory_space<vmem>>, %arg5: memref<16x64xf32, #tpu.memory_space<vmem>>) attributes {dimension_semantics = [#tpu.dimension_semantics<parallel>], iteration_bounds = array<i64: 1>, scalar_prefetch = 0 : i64, scratch_operands = 0 : i64, tpu.core_type = #tpu.core_type<tc>, window_params = [{transform_indices = @transform_0, window_bounds = array<i64: 1>}, {pipeline_mode = #tpu.pipeline_mode<synchronous>, transform_indices = @transform_1, window_bounds = array<i64: 16, 8>}, {transform_indices = @transform_2, window_bounds = array<i64: 16, 64>}, {transform_indices = @transform_3, window_bounds = array<i64: 8, 64>}, {transform_indices = @transform_4, window_bounds = array<i64: 16, 64>}]} {
    %c0 = arith.constant 0 : index
    %0 = memref.load %arg1[%c0] : memref<1xf32, #tpu.memory_space<smem>>
    %c0_0 = arith.constant 0 : index
    %c0_1 = arith.constant 0 : index
    %1 = vector.load %arg2[%c0_0, %c0_1] : memref<16x8xf32, #tpu.memory_space<vmem>>, vector<16x8xf32>
    %c0_2 = arith.constant 0 : index
    %c0_3 = arith.constant 0 : index
    %2 = vector.load %arg4[%c0_2, %c0_3] : memref<8x64xf32, #tpu.memory_space<vmem>>, vector<8x64xf32>
    %cst = arith.constant dense<0.000000e+00> : vector<16x64xf32>
    %3 = tpu.matmul %1, %2, %cst {dimension_numbers = #tpu.dot_dimension_numbers<[1], [0], [0], [1], [0, 0, 1, 1], [], []>} : vector<16x8xf32>, vector<8x64xf32>, vector<16x64xf32> -> vector<16x64xf32>
    %c0_4 = arith.constant 0 : index
    %c0_5 = arith.constant 0 : index
    %4 = vector.load %arg3[%c0_4, %c0_5] : memref<16x64xf32, #tpu.memory_space<vmem>>, vector<16x64xf32>
    %5 = vector.broadcast %0 : f32 to vector<16x64xf32>
    %6 = arith.mulf %5, %4 : vector<16x64xf32>
    %7 = arith.addf %6, %3 : vector<16x64xf32>
    %c0_6 = arith.constant 0 : index
    %c0_7 = arith.constant 0 : index
    %8 = vector.load %arg5[%c0_6, %c0_7] : memref<16x64xf32, #tpu.memory_space<vmem>>, vector<16x64xf32>
    tpu.vector_store %arg5[%c0_6, %c0_7], %7 {strides = array<i32>} : memref<16x64xf32, #tpu.memory_space<vmem>>, vector<16x64xf32>,
    return
  }
  func.func @transform_0(%arg0: i32) -> i32 {
    %c0_i32 = arith.constant 0 : i32
    %c0_i32_0 = arith.constant 0 : i32
    return %c0_i32 : i32
  }
  func.func @transform_1(%arg0: i32) -> (i32, i32) {
    %c0_i32 = arith.constant 0 : i32
    %c0_i32_0 = arith.constant 0 : i32
    %c0_i32_1 = arith.constant 0 : i32
    return %c0_i32, %c0_i32_0 : i32, i32
  }
  func.func @transform_2(%arg0: i32) -> (i32, i32) {
    %c0_i32 = arith.constant 0 : i32
    %c0_i32_0 = arith.constant 0 : i32
    return %c0_i32, %arg0 : i32, i32
  }
  func.func @transform_3(%arg0: i32) -> (i32, i32) {
    %c0_i32 = arith.constant 0 : i32
    %c0_i32_0 = arith.constant 0 : i32
    return %c0_i32, %arg0 : i32, i32
  }
  func.func @transform_4(%arg0: i32) -> (i32, i32) {
    %c0_i32 = arith.constant 0 : i32
    %c0_i32_0 = arith.constant 0 : i32
    return %c0_i32, %arg0 : i32, i32
  }
}

</mosaic_0001>

<bundles_post_ra>
// kernel: tpu_custom_call.1
= control target key start
LH: loop header
LB: loop body
LE: loop exit
PB: predicated region body
PF: predicated region fallthrough
CT: control target
= control target key end

     0   :  { %vm23_vm0 = vcmask 64512   ;;  %s215_s0 = inlined_call_operand.<no memory space> [shape: f32[1], index: 0, kind: input, shape index: {}]   ;;  %s216_s1 = inlined_call_operand.vmem [shape: f32[16,8], index: 1, kind: input, shape index: {}]   ;;  %s217_s2 = inlined_call_operand.vmem [shape: f32[16,64], index: 2, kind: input, shape index: {}]   ;;  %s218_s3 = inlined_call_operand.vmem [shape: f32[8,64], index: 3, kind: input, shape index: {}]   ;;  %s219_s4 = inlined_call_operand.hbm [shape: f32[16,64], index: 4, kind: output, shape index: {}]  }
   0x1   :  { %v22_v0 = vld [vmem:[%s218_s3] sm:$0xff]  ;;  %v21_v2 = vld [vmem:[%s216_s1 + $0x8] sm:$0xff] }
   0x2   :  { %v20_v1 = vld [vmem:[%s216_s1] sm:$0xff]  ;;  %136 = vmatprep.subr.mxu0 %v22_v0 }
   0x3   :  { %138 = vmatprep.mubr.msk.f32.mxu0 %vm23_vm0, %v20_v1 }
   0x4   :  { %10 = vsyncpa [#allocation4], 0  ;;  %137 = vmatpush3.msra.mxu0 %v22_v0  ;;  %v106_v3 = vld [vmem:[%s217_s2 + $0x8] sm:$0xff]  ;;  %v107_v4 = vstv %s215_s0  ;;  %v105_v5 = vld [vmem:[%s217_s2] sm:$0xff]  ;;  %s166_s1 = smov [#allocation3]   ;;  %vm112_vm1 = vcmask 523264  }
   0x5   :  { %139 = vmatmul.mubr.msk.f32.vlgmr.msra.gmra.mxu0 %vm23_vm0, %v21_v2  ;;  %v109_v6 = vmul.f32 %v107_v4, %v106_v3  ;;  %v108_v7 = vmul.f32 %v107_v4, %v105_v5  ;;  %s120_s26 = sshll.u32 %s166_s1, 4  ;;  %s121_s26 = int_to_ptr.vmem [resolvable:$true] %s120_s26 }
   0x6   :  { %s144_s27 = scalar_lea.vmem %s121_s26, 256  ;;  %p149_p1 = scmp.lt.s32.totalorder %s121_s26, %s121_s26 }
   0x7   :  { %p145_p0 = scmp.ne.s32.totalorder %s121_s26, %s144_s27  ;;  %p150_p2 = scmp.lt.s32.totalorder %s144_s27, %s144_s27 }
   0x9   :  { %p151_p3 = por %p150_p2, %p149_p1 }
   0xb   :  { %p152_p4 = pnand %p151_p3, %p145_p0 }
  0xc5   :  { %v140_v8 = vpop.f32.mrf.mxu0 }
  0xc6   :  { %v111_v9 = vadd.f32 %v140_v8, %v109_v6 }
  0xc7   :  { %v96_v10 = vpop.f32.mrf.mxu0 }
  0xc8   :  { %114 = vst.msk [vmem:[#allocation3 + $0x8] sm:$0xff] %vm112_vm1, %v111_v9  ;;  %v110_v11 = vadd.f32 %v108_v7, %v96_v10 }
  0xca   :  { %113 = vst.msk [vmem:[#allocation3] sm:$0xff] %vm112_vm1, %v110_v11 }
  0xcb   :  { %155 = shalt.err (!%p152_p4)
}
  0xcc   :  { %s167_s0 = smov 128   ;;  %s168_s2 = smov 8  }
  0xcd   :  { %126 = dma.vmem_to_hbm [thread:$0]  %s121_s26, 256, %s219_s4, [#allocation4], %s167_s0, %s167_s0, %s168_s2  }
  0xce   :  { %164 = dma.done.wait [#allocation4], 256  }
  0xcf   :  { %165 = vsyncadd [#allocation4], 4294967040 }
  0xd0   :  { %130 = vsyncpa [#allocation4], 1 }

</bundles_post_ra>
